<compile_context>
chip_gen: v7x
topology: tpu7x:2x2x1
jax: 0.10.0
libtpu: 0.0.40
codegen_flags: <defaults>
</compile_context>

<pallas_src>
import functools

import jax
import jax.numpy as jnp
from jax.experimental import pallas as pl
from jax.experimental.pallas import tpu as pltpu

LANE = 128
# VMEM budget for the double-buffered logits + target input tiles. 8 MiB sits
# comfortably under the scoped-VMEM defaults on v5e (16 MiB), v6e/v7x (32 MiB).
_VMEM_BUDGET_BYTES = 8 * 1024 * 1024
_MAX_TILE_HW = 16 * 1024  # cap per-step tile so per-step DMA / unroll stay sane


def _round_up(a, m):
    return ((a + m - 1) // m) * m


def _dice_bce_kernel(x_ref, t_ref, pt_ref, p_ref, bce_ref, *,
                     hw, tile_hw, chunk, n_blk, c):
    j = pl.program_id(1)

    @pl.when(j == 0)
    def _init():
        pt_ref[...] = jnp.zeros_like(pt_ref)
        p_ref[...] = jnp.zeros_like(p_ref)
        bce_ref[...] = jnp.zeros_like(bce_ref)

    cls_iota = jax.lax.broadcasted_iota(jnp.int32, (c, chunk), 0)
    lane_iota = jax.lax.broadcasted_iota(jnp.int32, (c, chunk), 1)
    tile_start = j * tile_hw

    def body(k, carry):
        pt_part, p_part, bce_part = carry
        off = pl.multiple_of(k * chunk, chunk)
        x = x_ref[0, :, pl.ds(off, chunk)].astype(jnp.float32)   # (C, chunk)
        tgt = t_ref[0, :, pl.ds(off, chunk)].astype(jnp.int32)   # (1, chunk)

        onehot = (cls_iota == tgt).astype(jnp.float32)           # in-kernel one-hot
        valid = (tile_start + off + lane_iota) < hw              # ragged-tail mask

        th = jnp.tanh(0.5 * x)
        p = 0.5 + 0.5 * th                                       # sigmoid(x)
        # BCE from logits: max(x,0) - x*t + softplus(-|x|),
        # with softplus(-|x|) = -log(0.5 + 0.5*|tanh(x/2)|).
        bce = jnp.maximum(x, 0.0) - x * onehot - jnp.log(0.5 + 0.5 * jnp.abs(th))

        # Mask garbage lanes of the partial tail block (p -> 0 also zeroes p*t).
        p = jnp.where(valid, p, 0.0)
        bce = jnp.where(valid, bce, 0.0)

        return (pt_part + p * onehot, p_part + p, bce_part + bce)

    zero = jnp.zeros((c, chunk), jnp.float32)
    pt_part, p_part, bce_part = jax.lax.fori_loop(
        0, n_blk, body, (zero, zero, zero), unroll=min(n_blk, 8))

    # Only 3 vector loads + 3 stores per grid step hit the accumulator block.
    pt_ref[0] += pt_part
    p_ref[0] += p_part
    bce_ref[0] += bce_part


def _reduce_maps(logits, targets):
    b, c, h, w = logits.shape
    hw = h * w

    c8 = _round_up(c, 8)
    if hw >= LANE:
        # Double-buffered logits (c8 sublanes) + targets (padded to 8 sublanes).
        per_lane_bytes = 4 * (2 * c8 + 2 * 8)
        tile_hw = (_VMEM_BUDGET_BYTES // per_lane_bytes) // LANE * LANE
        tile_hw = min(tile_hw, _MAX_TILE_HW, (hw // LANE) * LANE)
        tile_hw = max(tile_hw, LANE)
        chunk = LANE
    else:
        tile_hw = hw
        chunk = hw
    n_blk = tile_hw // chunk

    x3 = logits.reshape(b, c, hw)
    t3 = targets.reshape(b, 1, hw)          # keep original (narrow) int dtype

    grid = (b, pl.cdiv(hw, tile_hw))        # no HBM padding copy; tail masked

    kernel = functools.partial(_dice_bce_kernel, hw=hw, tile_hw=tile_hw,
                               chunk=chunk, n_blk=n_blk, c=c)

    out_sds = jax.ShapeDtypeStruct((b, c, chunk), jnp.float32)
    out_spec = pl.BlockSpec((1, c, chunk), lambda bi, j: (bi, 0, 0))

    return pl.pallas_call(
        kernel,
        out_shape=(out_sds, out_sds, out_sds),
        grid_spec=pltpu.PrefetchScalarGridSpec(
            num_scalar_prefetch=0,
            grid=grid,
            in_specs=[
                pl.BlockSpec((1, c, tile_hw), lambda bi, j: (bi, 0, j)),
                pl.BlockSpec((1, 1, tile_hw), lambda bi, j: (bi, 0, j)),
            ],
            out_specs=(out_spec, out_spec, out_spec),
        ),
        compiler_params=pltpu.CompilerParams(
            # Per-batch partial outputs -> batch axis is race-free "parallel"
            # (v7x 2-TC split); HW axis is the reduction -> "arbitrary".
            dimension_semantics=("parallel", "arbitrary"),
        ),
    )(x3, t3)


@functools.partial(jax.jit, static_argnames=("smooth",))
def dice_bce_loss(logits, targets, smooth=1.0):
    """Matches DiceBCELoss.forward(weight=None).

    logits:  float [B, C, H, W]  (raw scores; sigmoid applied in-kernel)
    targets: int   [B, H, W]     (class indices in [0, C))
    """
    b, c, h, w = logits.shape
    pt_map, p_map, bce_map = _reduce_maps(logits, targets)

    intersection = jnp.sum(pt_map)          # sum(p * one_hot)
    sum_p = jnp.sum(p_map)                  # sum(p)
    bce_sum = jnp.sum(bce_map)              # sum of per-element BCE terms
    sum_t = jnp.float32(b * h * w)          # one-hot sums to 1 per valid pixel

    n = jnp.float32(b * c * h * w)
    dice_loss = 1.0 - (2.0 * intersection + smooth) / (sum_p + sum_t + smooth)
    bce = bce_sum / n
    return bce / 2.0 + dice_loss / 2.0


def _reference(logits, targets, smooth=1.0):
    """Plain-JAX mirror of the PyTorch module (eps-in-log formulation)."""
    c = logits.shape[1]
    p = jax.nn.sigmoid(logits.astype(jnp.float32)).reshape(-1)
    t = jax.nn.one_hot(targets, c, axis=1, dtype=jnp.float32).reshape(-1)
    inter = jnp.sum(p * t)
    dice = 1.0 - (2.0 * inter + smooth) / (jnp.sum(p) + jnp.sum(t) + smooth)
    eps = 1e-12
    bce = jnp.mean(-t * jnp.log(p + eps) - (1.0 - t) * jnp.log(1.0 - p + eps))
    return bce / 2.0 + dice / 2.0


if __name__ == "__main__":
    key = jax.random.PRNGKey(0)
    k1, k2 = jax.random.split(key)
    B, C, H, W = 2, 4, 16, 16
    logits = jax.random.normal(k1, (B, C, H, W), dtype=jnp.float32)
    targets = jax.random.randint(k2, (B, H, W), 0, C, dtype=jnp.int32)

    out = dice_bce_loss(logits, targets, smooth=1.0)
    out = jax.block_until_ready(out)

    ref = _reference(logits, targets, smooth=1.0)
    # Tolerance: EUP tanh/log in-kernel (logits-form BCE) vs eps-in-log reference.
    assert jnp.allclose(out, ref, rtol=2e-3, atol=2e-4), (out, ref)
    print("KERNEL_OK")
</pallas_src>

<mosaic_0001>
module attributes {stable_mosaic.version = 11 : i64} {
  func.func @_dice_bce_kernel(%arg0: i32, %arg1: i32, %arg2: memref<1x4x256xf32, #tpu.memory_space<vmem>>, %arg3: memref<1x1x256xi32, #tpu.memory_space<vmem>>, %arg4: memref<1x4x128xf32, #tpu.memory_space<vmem>>, %arg5: memref<1x4x128xf32, #tpu.memory_space<vmem>>, %arg6: memref<1x4x128xf32, #tpu.memory_space<vmem>>) attributes {dimension_semantics = [#tpu.dimension_semantics<parallel>, #tpu.dimension_semantics<arbitrary>], iteration_bounds = array<i64: 2, 1>, scalar_prefetch = 0 : i64, scratch_operands = 0 : i64, tpu.core_type = #tpu.core_type<tc>, window_params = [{transform_indices = @transform_0, window_bounds = array<i64: 1, 4, 256>}, {transform_indices = @transform_1, window_bounds = array<i64: 1, 1, 256>}, {transform_indices = @transform_2, window_bounds = array<i64: 1, 4, 128>}, {transform_indices = @transform_3, window_bounds = array<i64: 1, 4, 128>}, {transform_indices = @transform_4, window_bounds = array<i64: 1, 4, 128>}]} {
    %c0_i32 = arith.constant 0 : i32
    %0 = arith.cmpi eq, %arg1, %c0_i32 : i32
    %1 = arith.extui %0 : i1 to i32
    %c0_i32_0 = arith.constant 0 : i32
    %2 = arith.cmpi ne, %1, %c0_i32_0 : i32
    scf.if %2 {
      %cst_46 = arith.constant 0.000000e+00 : f32
      %111 = vector.broadcast %cst_46 : f32 to vector<1x4x128xf32>
      %c0_47 = arith.constant 0 : index
      %c0_48 = arith.constant 0 : index
      %c0_49 = arith.constant 0 : index
      %112 = vector.load %arg4[%c0_47, %c0_48, %c0_49] : memref<1x4x128xf32, #tpu.memory_space<vmem>>, vector<1x4x128xf32>
      tpu.vector_store %arg4[%c0_47, %c0_48, %c0_49], %111 {strides = array<i32>} : memref<1x4x128xf32, #tpu.memory_space<vmem>>, vector<1x4x128xf32>,
      %cst_50 = arith.constant 0.000000e+00 : f32
      %113 = vector.broadcast %cst_50 : f32 to vector<1x4x128xf32>
      %c0_51 = arith.constant 0 : index
      %c0_52 = arith.constant 0 : index
      %c0_53 = arith.constant 0 : index
      %114 = vector.load %arg5[%c0_51, %c0_52, %c0_53] : memref<1x4x128xf32, #tpu.memory_space<vmem>>, vector<1x4x128xf32>
      tpu.vector_store %arg5[%c0_51, %c0_52, %c0_53], %113 {strides = array<i32>} : memref<1x4x128xf32, #tpu.memory_space<vmem>>, vector<1x4x128xf32>,
      %cst_54 = arith.constant 0.000000e+00 : f32
      %115 = vector.broadcast %cst_54 : f32 to vector<1x4x128xf32>
      %c0_55 = arith.constant 0 : index
      %c0_56 = arith.constant 0 : index
      %c0_57 = arith.constant 0 : index
      %116 = vector.load %arg6[%c0_55, %c0_56, %c0_57] : memref<1x4x128xf32, #tpu.memory_space<vmem>>, vector<1x4x128xf32>
      tpu.vector_store %arg6[%c0_55, %c0_56, %c0_57], %115 {strides = array<i32>} : memref<1x4x128xf32, #tpu.memory_space<vmem>>, vector<1x4x128xf32>,
    } else {
    }
    %3 = tpu.iota {dimensions = array<i32: 0>} : vector<4x128xi32>
    %4 = tpu.iota {dimensions = array<i32: 1>} : vector<4x128xi32>
    %c256_i32 = arith.constant 256 : i32
    %5 = arith.muli %arg1, %c256_i32 : i32
    %cst = arith.constant 0.000000e+00 : f32
    %6 = vector.broadcast %cst : f32 to vector<4x128xf32>
    %c0_i32_1 = arith.constant 0 : i32
    %c128_i32 = arith.constant 128 : i32
    %7 = arith.muli %c0_i32_1, %c128_i32 : i32
    %8 = tpu.assume_multiple %7, 128 : i32
    %c0 = arith.constant 0 : index
    %c0_2 = arith.constant 0 : index
    %9 = arith.index_cast %8 : i32 to index
    %10 = vector.load %arg2[%c0, %c0_2, %9] : memref<1x4x256xf32, #tpu.memory_space<vmem>>, vector<1x4x128xf32>
    %11 = vector.shape_cast %10 : vector<1x4x128xf32> to vector<4x128xf32>
    %c0_3 = arith.constant 0 : index
    %c0_4 = arith.constant 0 : index
    %12 = arith.index_cast %8 : i32 to index
    %13 = vector.load %arg3[%c0_3, %c0_4, %12] : memref<1x1x256xi32, #tpu.memory_space<vmem>>, vector<1x1x128xi32>
    %14 = vector.shape_cast %13 : vector<1x1x128xi32> to vector<1x128xi32>
    %15 = vector.broadcast %14 : vector<1x128xi32> to vector<4x128xi32>
    %16 = arith.cmpi eq, %3, %15 : vector<4x128xi32>
    %17 = arith.extui %16 : vector<4x128xi1> to vector<4x128xi32>
    %18 = arith.sitofp %17 : vector<4x128xi32> to vector<4x128xf32>
    %19 = arith.addi %5, %8 : i32
    %20 = vector.broadcast %19 : i32 to vector<4x128xi32>
    %21 = arith.addi %20, %4 : vector<4x128xi32>
    %c256_i32_5 = arith.constant 256 : i32
    %22 = vector.broadcast %c256_i32_5 : i32 to vector<4x128xi32>
    %23 = arith.cmpi slt, %21, %22 : vector<4x128xi32>
    %cst_6 = arith.constant 5.000000e-01 : f32
    %24 = vector.broadcast %cst_6 : f32 to vector<4x128xf32>
    %25 = arith.mulf %24, %11 : vector<4x128xf32>
    %26 = math.tanh %25 : vector<4x128xf32>
    %cst_7 = arith.constant 5.000000e-01 : f32
    %27 = vector.broadcast %cst_7 : f32 to vector<4x128xf32>
    %28 = arith.mulf %27, %26 : vector<4x128xf32>
    %cst_8 = arith.constant 5.000000e-01 : f32
    %29 = vector.broadcast %cst_8 : f32 to vector<4x128xf32>
    %30 = arith.addf %29, %28 : vector<4x128xf32>
    %cst_9 = arith.constant 0.000000e+00 : f32
    %31 = vector.broadcast %cst_9 : f32 to vector<4x128xf32>
    %32 = arith.maximumf %11, %31 : vector<4x128xf32>
    %33 = arith.mulf %11, %18 : vector<4x128xf32>
    %34 = arith.subf %32, %33 : vector<4x128xf32>
    %35 = math.absf %26 : vector<4x128xf32>
    %cst_10 = arith.constant 5.000000e-01 : f32
    %36 = vector.broadcast %cst_10 : f32 to vector<4x128xf32>
    %37 = arith.mulf %36, %35 : vector<4x128xf32>
    %cst_11 = arith.constant 5.000000e-01 : f32
    %38 = vector.broadcast %cst_11 : f32 to vector<4x128xf32>
    %39 = arith.addf %38, %37 : vector<4x128xf32>
    %40 = math.log %39 : vector<4x128xf32>
    %41 = arith.subf %34, %40 : vector<4x128xf32>
    %cst_12 = arith.constant 0.000000e+00 : f32
    %42 = vector.broadcast %cst_12 : f32 to vector<4x128xf32>
    %43 = arith.select %23, %30, %42 : vector<4x128xi1>, vector<4x128xf32>
    %cst_13 = arith.constant 0.000000e+00 : f32
    %44 = vector.broadcast %cst_13 : f32 to vector<4x128xf32>
    %45 = arith.select %23, %41, %44 : vector<4x128xi1>, vector<4x128xf32>
    %46 = arith.mulf %43, %18 : vector<4x128xf32>
    %47 = arith.addf %6, %46 : vector<4x128xf32>
    %48 = arith.addf %6, %43 : vector<4x128xf32>
    %49 = arith.addf %6, %45 : vector<4x128xf32>
    %c1_i32 = arith.constant 1 : i32
    %c128_i32_14 = arith.constant 128 : i32
    %50 = arith.muli %c1_i32, %c128_i32_14 : i32
    %51 = tpu.assume_multiple %50, 128 : i32
    %c0_15 = arith.constant 0 : index
    %c0_16 = arith.constant 0 : index
    %52 = arith.index_cast %51 : i32 to index
    %53 = vector.load %arg2[%c0_15, %c0_16, %52] : memref<1x4x256xf32, #tpu.memory_space<vmem>>, vector<1x4x128xf32>
    %54 = vector.shape_cast %53 : vector<1x4x128xf32> to vector<4x128xf32>
    %c0_17 = arith.constant 0 : index
    %c0_18 = arith.constant 0 : index
    %55 = arith.index_cast %51 : i32 to index
    %56 = vector.load %arg3[%c0_17, %c0_18, %55] : memref<1x1x256xi32, #tpu.memory_space<vmem>>, vector<1x1x128xi32>
    %57 = vector.shape_cast %56 : vector<1x1x128xi32> to vector<1x128xi32>
    %58 = vector.broadcast %57 : vector<1x128xi32> to vector<4x128xi32>
    %59 = arith.cmpi eq, %3, %58 : vector<4x128xi32>
    %60 = arith.extui %59 : vector<4x128xi1> to vector<4x128xi32>
    %61 = arith.sitofp %60 : vector<4x128xi32> to vector<4x128xf32>
    %62 = arith.addi %5, %51 : i32
    %63 = vector.broadcast %62 : i32 to vector<4x128xi32>
    %64 = arith.addi %63, %4 : vector<4x128xi32>
    %c256_i32_19 = arith.constant 256 : i32
    %65 = vector.broadcast %c256_i32_19 : i32 to vector<4x128xi32>
    %66 = arith.cmpi slt, %64, %65 : vector<4x128xi32>
    %cst_20 = arith.constant 5.000000e-01 : f32
    %67 = vector.broadcast %cst_20 : f32 to vector<4x128xf32>
    %68 = arith.mulf %67, %54 : vector<4x128xf32>
    %69 = math.tanh %68 : vector<4x128xf32>
    %cst_21 = arith.constant 5.000000e-01 : f32
    %70 = vector.broadcast %cst_21 : f32 to vector<4x128xf32>
    %71 = arith.mulf %70, %69 : vector<4x128xf32>
    %cst_22 = arith.constant 5.000000e-01 : f32
    %72 = vector.broadcast %cst_22 : f32 to vector<4x128xf32>
    %73 = arith.addf %72, %71 : vector<4x128xf32>
    %cst_23 = arith.constant 0.000000e+00 : f32
    %74 = vector.broadcast %cst_23 : f32 to vector<4x128xf32>
    %75 = arith.maximumf %54, %74 : vector<4x128xf32>
    %76 = arith.mulf %54, %61 : vector<4x128xf32>
    %77 = arith.subf %75, %76 : vector<4x128xf32>
    %78 = math.absf %69 : vector<4x128xf32>
    %cst_24 = arith.constant 5.000000e-01 : f32
    %79 = vector.broadcast %cst_24 : f32 to vector<4x128xf32>
    %80 = arith.mulf %79, %78 : vector<4x128xf32>
    %cst_25 = arith.constant 5.000000e-01 : f32
    %81 = vector.broadcast %cst_25 : f32 to vector<4x128xf32>
    %82 = arith.addf %81, %80 : vector<4x128xf32>
    %83 = math.log %82 : vector<4x128xf32>
    %84 = arith.subf %77, %83 : vector<4x128xf32>
    %cst_26 = arith.constant 0.000000e+00 : f32
    %85 = vector.broadcast %cst_26 : f32 to vector<4x128xf32>
    %86 = arith.select %66, %73, %85 : vector<4x128xi1>, vector<4x128xf32>
    %cst_27 = arith.constant 0.000000e+00 : f32
    %87 = vector.broadcast %cst_27 : f32 to vector<4x128xf32>
    %88 = arith.select %66, %84, %87 : vector<4x128xi1>, vector<4x128xf32>
    %89 = arith.mulf %86, %61 : vector<4x128xf32>
    %90 = arith.addf %47, %89 : vector<4x128xf32>
    %91 = arith.addf %48, %86 : vector<4x128xf32>
    %92 = arith.addf %49, %88 : vector<4x128xf32>
    %c2_i32 = arith.constant 2 : i32
    %c0_28 = arith.constant 0 : index
    %c0_29 = arith.constant 0 : index
    %c0_30 = arith.constant 0 : index
    %93 = vector.load %arg4[%c0_28, %c0_29, %c0_30] : memref<1x4x128xf32, #tpu.memory_space<vmem>>, vector<1x4x128xf32>
    %94 = vector.shape_cast %93 : vector<1x4x128xf32> to vector<4x128xf32>
    %95 = arith.addf %94, %90 : vector<4x128xf32>
    %c0_31 = arith.constant 0 : index
    %c0_32 = arith.constant 0 : index
    %c0_33 = arith.constant 0 : index
    %96 = vector.load %arg4[%c0_31, %c0_32, %c0_33] : memref<1x4x128xf32, #tpu.memory_space<vmem>>, vector<1x4x128xf32>
    %97 = vector.shape_cast %96 : vector<1x4x128xf32> to vector<4x128xf32>
    %98 = vector.shape_cast %95 : vector<4x128xf32> to vector<1x4x128xf32>
    tpu.vector_store %arg4[%c0_31, %c0_32, %c0_33], %98 {strides = array<i32>} : memref<1x4x128xf32, #tpu.memory_space<vmem>>, vector<1x4x128xf32>,
    %c0_34 = arith.constant 0 : index
    %c0_35 = arith.constant 0 : index
    %c0_36 = arith.constant 0 : index
    %99 = vector.load %arg5[%c0_34, %c0_35, %c0_36] : memref<1x4x128xf32, #tpu.memory_space<vmem>>, vector<1x4x128xf32>
    %100 = vector.shape_cast %99 : vector<1x4x128xf32> to vector<4x128xf32>
    %101 = arith.addf %100, %91 : vector<4x128xf32>
    %c0_37 = arith.constant 0 : index
    %c0_38 = arith.constant 0 : index
    %c0_39 = arith.constant 0 : index
    %102 = vector.load %arg5[%c0_37, %c0_38, %c0_39] : memref<1x4x128xf32, #tpu.memory_space<vmem>>, vector<1x4x128xf32>
    %103 = vector.shape_cast %102 : vector<1x4x128xf32> to vector<4x128xf32>
    %104 = vector.shape_cast %101 : vector<4x128xf32> to vector<1x4x128xf32>
    tpu.vector_store %arg5[%c0_37, %c0_38, %c0_39], %104 {strides = array<i32>} : memref<1x4x128xf32, #tpu.memory_space<vmem>>, vector<1x4x128xf32>,
    %c0_40 = arith.constant 0 : index
    %c0_41 = arith.constant 0 : index
    %c0_42 = arith.constant 0 : index
    %105 = vector.load %arg6[%c0_40, %c0_41, %c0_42] : memref<1x4x128xf32, #tpu.memory_space<vmem>>, vector<1x4x128xf32>
    %106 = vector.shape_cast %105 : vector<1x4x128xf32> to vector<4x128xf32>
    %107 = arith.addf %106, %92 : vector<4x128xf32>
    %c0_43 = arith.constant 0 : index
    %c0_44 = arith.constant 0 : index
    %c0_45 = arith.constant 0 : index
    %108 = vector.load %arg6[%c0_43, %c0_44, %c0_45] : memref<1x4x128xf32, #tpu.memory_space<vmem>>, vector<1x4x128xf32>
    %109 = vector.shape_cast %108 : vector<1x4x128xf32> to vector<4x128xf32>
    %110 = vector.shape_cast %107 : vector<4x128xf32> to vector<1x4x128xf32>
    tpu.vector_store %arg6[%c0_43, %c0_44, %c0_45], %110 {strides = array<i32>} : memref<1x4x128xf32, #tpu.memory_space<vmem>>, vector<1x4x128xf32>,
    return
  }
  func.func @transform_0(%arg0: i32, %arg1: i32) -> (i32, i32, i32) {
    %c0_i32 = arith.constant 0 : i32
    %c0_i32_0 = arith.constant 0 : i32
    return %arg0, %c0_i32, %arg1 : i32, i32, i32
  }
  func.func @transform_1(%arg0: i32, %arg1: i32) -> (i32, i32, i32) {
    %c0_i32 = arith.constant 0 : i32
    %c0_i32_0 = arith.constant 0 : i32
    return %arg0, %c0_i32, %arg1 : i32, i32, i32
  }
  func.func @transform_2(%arg0: i32, %arg1: i32) -> (i32, i32, i32) {
    %c0_i32 = arith.constant 0 : i32
    %c0_i32_0 = arith.constant 0 : i32
    %c0_i32_1 = arith.constant 0 : i32
    return %arg0, %c0_i32, %c0_i32_0 : i32, i32, i32
  }
  func.func @transform_3(%arg0: i32, %arg1: i32) -> (i32, i32, i32) {
    %c0_i32 = arith.constant 0 : i32
    %c0_i32_0 = arith.constant 0 : i32
    %c0_i32_1 = arith.constant 0 : i32
    return %arg0, %c0_i32, %c0_i32_0 : i32, i32, i32
  }
  func.func @transform_4(%arg0: i32, %arg1: i32) -> (i32, i32, i32) {
    %c0_i32 = arith.constant 0 : i32
    %c0_i32_0 = arith.constant 0 : i32
    %c0_i32_1 = arith.constant 0 : i32
    return %arg0, %c0_i32, %c0_i32_0 : i32, i32, i32
  }
}

</mosaic_0001>

<bundles_post_ra>
// kernel: dice_bce_loss.1
= control target key start
LH: loop header
LB: loop body
LE: loop exit
PB: predicated region body
PF: predicated region fallthrough
CT: control target
= control target key end

     0   :  { %s612_s15 = smov 0   ;;  %s614_s16 = smov 0   ;;  %s669_s0 = inlined_call_operand.vmem [shape: f32[2,4,256], index: 0, kind: input, shape index: {}]   ;;  %s670_s1 = inlined_call_operand.vmem [shape: s32[2,1,256], index: 1, kind: input, shape index: {}]   ;;  %s671_s2 = inlined_call_operand.vmem [shape: f32[2,4,128], index: 2, kind: output, shape index: {0}]   ;;  %s672_s3 = inlined_call_operand.vmem [shape: f32[2,4,128], index: 3, kind: output, shape index: {1}]   ;;  %s673_s4 = inlined_call_operand.vmem [shape: f32[2,4,128], index: 4, kind: output, shape index: {2}]  }
   0x1   :  { %s616_s17 = smov 0  }
   0x2 LB: > { %s27_s18 = sadd.s32 1, %s580_s16  ;;  %p513_p0 = scmp.ge.s32.totalorder %s584_s17, 1  ;;  %s584_s17 = sphi %s616_s17, %s15_s17   ;;  %s580_s16 = sphi %s614_s16, %s675_s16   ;;  %s576_s15 = sphi %s612_s15, %s674_s15  }
   0x3   : > { %p29_p1 = scmp.ge.s32.totalorder %s27_s18, 2  ;;  %p202_p2 = scmp.lt.s32.totalorder %s584_s17, 3 }
   0x5   : > { %s677_s18 = smov (%p29_p1, %s27_s18), 0  ;;  %p203_p3 = pnand %p513_p0, %p202_p2 }
   0x6   : > { %p248_p4 = scmp.lt.s32.totalorder (!%p203_p3), %s576_s15, 1  ;;  %v586_v0 = vmov (!%p203_p3), 0.0   ;;  %v285_v5 = vlaneseq (!%p203_p3) }
   0x7   : > { %206 = sbr.rel (%p203_p3) target bundleno = 58 (0x3a), region = 28 }
   0x8   : > { %v286_v6 = vshrl.u32 (!%p203_p3), %v285_v5, 7 }
   0xe   : > { %s679_s15 = smov (!%p248_p4, %s576_s15), 1 }
   0xf   : > { %s528_s19 = sshll.u32 %s679_s15, 3  ;;  %s517_s20 = sshll.u32 %s679_s15, 2 }
  0x10   : > { %s255_s23 = scalar_lea.vmem %s669_s0, %s528_s19  ;;  %s636_s26 = scalar_lea.vmem %s671_s2, %s517_s20 }
  0x11   : > { %282 = vst [vmem:[%s636_s26] sm:$0xf] %v586_v0  ;;  %s642_s29 = scalar_lea.vmem %s672_s3, %s517_s20  ;;  %s647_s6 = scalar_lea.vmem %s673_s4, %s517_s20  ;;  %v290_v1 = vld [vmem:[%s255_s23] sm:$0xf]  ;;  %v522_v2 = vld [vmem:[%s255_s23 + $0x4] sm:$0xf] }
  0x12   : > { %283 = vst [vmem:[%s642_s29] sm:$0xf] %v586_v0  ;;  %284 = vst [vmem:[%s647_s6] sm:$0xf] %v586_v0  ;;  %v303_v3 = vmul.f32 0.5, %v290_v1  ;;  %v337_v4 = vmul.f32 0.5, %v522_v2  ;;  %s516_s7 = sshll.u32 %s679_s15, 1  ;;  %v307_v32 = vmax.f32 %v290_v1, 0.0 }
  0x13   : > { %s264_s10 = scalar_lea.vmem %s670_s1, %s516_s7  ;;  %v341_v34 = vmax.f32 %v522_v2, 0.0 }
  0x14   : > { %554 = vtanh.f32 %v303_v3  ;;  %v520_v7 = vld [vmem:[%s264_s10] ss:$0 sm:$0xff]  ;;  %v524_v8 = vld [vmem:[%s264_s10 + $0x1] ss:$0 sm:$0xff] }
  0x15   : > { %556 = vtanh.f32 %v337_v4  ;;  %vm296_vm0 = vcmp.eq.s32.totalorder %v286_v6, %v520_v7  ;;  %vm330_vm1 = vcmp.eq.s32.totalorder %v286_v6, %v524_v8 }
  0x16   : > { %v521_v17 = vsel %vm296_vm0, 1.0, %v586_v0  ;;  %v525_v21 = vsel %vm330_vm1, 1.0, %v586_v0 }
  0x17   : > { %v308_v31 = vmul.f32 %v521_v17, %v290_v1  ;;  %v342_v33 = vmul.f32 %v525_v21, %v522_v2 }
  0x18   : > { %v356_v27 = vld [vmem:[%s636_s26] sm:$0xf] }
  0x19   : > { %v359_v22 = vld [vmem:[%s642_s29] sm:$0xf]  ;;  %v309_v35 = vsub.f32 %v307_v32, %v308_v31  ;;  %v343_v37 = vsub.f32 %v341_v34, %v342_v33 }
  0x1a   : > { %v362_v43 = vld [vmem:[%s647_s6] sm:$0xf] }
  0x1e   : > { %v555_v9 = vpop.eup %554 }
  0x1f   : > { %v557_v10 = vpop.eup %556  ;;  %v305_v11 = vmul.f32 0.5, %v555_v9  ;;  %v310_v12 = vand.u32 2147483647, %v555_v9 }
  0x20   : > { %v339_v13 = vmul.f32 0.5, %v557_v10  ;;  %v344_v14 = vand.u32 2147483647, %v557_v10 }
  0x21   : > { %v306_v15 = vadd.f32 0.5, %v305_v11  ;;  %v311_v16 = vmul.f32 0.5, %v310_v12 }
  0x22   : > { %v340_v18 = vadd.f32 0.5, %v339_v13  ;;  %v345_v19 = vmul.f32 0.5, %v344_v14 }
  0x23   : > { %v318_v20 = vmul.f32 %v521_v17, %v306_v15  ;;  %v312_v23 = vadd.f32 0.5, %v311_v16 }
  0x24   : > { %v352_v24 = vmul.f32 %v525_v21, %v340_v18  ;;  %v354_v25 = vadd.f32 %v340_v18, %v306_v15  ;;  %v346_v26 = vadd.f32 0.5, %v345_v19 }
  0x25   : > { %558 = vlog2.f32 %v312_v23 }
  0x26   : > { %v353_v28 = vadd.f32 %v352_v24, %v318_v20  ;;  %v360_v29 = vadd.f32 %v359_v22, %v354_v25  ;;  %560 = vlog2.f32 %v346_v26 }
  0x28   : > { %v357_v30 = vadd.f32 %v356_v27, %v353_v28  ;;  %361 = vst [vmem:[%s642_s29] sm:$0xf] %v360_v29 }
  0x2a   : > { %358 = vst [vmem:[%s636_s26] sm:$0xf] %v357_v30 }
  0x2f   : > { %v559_v36 = vpop.eup %558 }
  0x30   : > { %v561_v38 = vpop.eup %560  ;;  %v314_v39 = vmul.f32 0.6931472, %v559_v36 }
  0x31   : > { %v348_v40 = vmul.f32 0.6931472, %v561_v38 }
  0x32   : > { %v315_v41 = vsub.f32 %v309_v35, %v314_v39 }
  0x33   : > { %v349_v42 = vsub.f32 %v343_v37, %v348_v40 }
  0x35   : > { %v355_v44 = vadd.f32 %v349_v42, %v315_v41 }
  0x37   : > { %v363_v45 = vadd.f32 %v362_v43, %v355_v44 }
  0x39   : > { %364 = vst [vmem:[%s647_s6] sm:$0xf] %v363_v45 }
  0x3a PF: > { %s15_s17 = sadd.s32 1, %s584_s17   ;;  %s674_s15 = smov %s580_s16 }
  0x3b   : > { %p12_p5 = scmp.ge.s32.totalorder %s15_s17, 4   ;;  %s675_s16 = smov %s677_s18 }
  0x3d   :  { %14 = sbr.rel (!%p12_p5) target bundleno = 2 (0x2), region = 91 }

</bundles_post_ra>
